<compile_context>
chip_gen: v7x
topology: tpu7x:2x2x1
jax: 0.10.0
libtpu: 0.0.40
codegen_flags: <defaults>
</compile_context>

<pallas_src>
import functools

import jax
import jax.numpy as jnp
from jax.experimental import pallas as pl
from jax.experimental.pallas import tpu as pltpu


def _sinkhorn_kernel(x_ref, y_ref, xs_ref, ys_ref, out_ref, acc_ref, *,
                     neg_inv_eps, p):
    i = pl.program_id(1)          # N-block index (reduction axis)
    j = pl.program_id(2)          # M-block index (reduction axis)

    @pl.when((i == 0) & (j == 0))
    def _():
        acc_ref[...] = jnp.zeros_like(acc_ref)

    x = x_ref[...]                # (tb, tn)
    y = y_ref[...]                # (tb, tm)
    xs = xs_ref[...]              # (1, tn)
    ys = ys_ref[...]              # (1, tm)

    def _pow(d):
        if p == 2:                # trace-time specialization: no abs, no pow
            return d * d
        return jnp.abs(d) ** p

    # cost matrix: torch cat's (support, value) along a size-2 dim and sums the
    # pairwise |.|^p distances over it.
    d_sup = _pow(xs[0, :, None] - ys[0, None, :])            # (tn, tm)
    d_val = _pow(x[:, :, None] - y[:, None, :])              # (tb, tn, tm)
    cost = d_val + d_sup[None, :, :]                         # (tb, tn, tm)

    # u = v = 0 in the reference (dead Sinkhorn loop) => M(cost,u,v) = -cost/eps.
    contrib = jnp.exp(cost * neg_inv_eps) * cost             # (tb, tn, tm)

    # steady state: sublane (N) reduce only; lane reduce deferred to finalize.
    acc_ref[...] += jnp.sum(contrib, axis=1)                 # (tb, tm)

    @pl.when((i == pl.num_programs(1) - 1) & (j == pl.num_programs(2) - 1))
    def _():
        total = jnp.sum(acc_ref[...], axis=1, keepdims=True)          # (tb, 1)
        out_ref[...] = jnp.broadcast_to(total, out_ref.shape).astype(out_ref.dtype)


def _pick_tile(dim, max_tile, align):
    """Largest `align`-aligned divisor of dim that is <= max_tile, else full dim."""
    if dim <= max_tile:
        return dim
    t = (max_tile // align) * align
    while t >= align:
        if dim % t == 0:
            return t
        t -= align
    return dim


def sinkhorn_distance(x, y, x_support, y_support, *, eps, max_iter, threshold,
                      reduction='None', p=2):
    # max_iter / threshold kept for signature parity with the torch module; the
    # reference loop never runs, so they do not affect the result.
    del max_iter, threshold

    x = jnp.asarray(x, jnp.float32)
    y = jnp.asarray(y, jnp.float32)
    if x.ndim == 1:
        x = x[None, :]
    if y.ndim == 1:
        y = y[None, :]
    B, N = x.shape
    M = y.shape[1]

    xs = jnp.asarray(x_support, x.dtype).reshape(1, N)
    ys = jnp.asarray(y_support, x.dtype).reshape(1, M)

    # Tile sizes: lane dims multiples of 128 (or full), sublane (batch) multiple
    # of 8 (or full). Sized so per-tile (tb, tn, tm) f32 intermediates stay
    # comfortably inside the 32 MiB scoped-VMEM default (also fits v7x).
    tile_b = _pick_tile(B, 8, 8)
    tile_n = _pick_tile(N, 256, 128)
    tile_m = _pick_tile(M, 256, 128)

    grid = (pl.cdiv(B, tile_b), pl.cdiv(N, tile_n), pl.cdiv(M, tile_m))

    kernel = functools.partial(_sinkhorn_kernel,
                               neg_inv_eps=-1.0 / float(eps), p=int(p))

    out = pl.pallas_call(
        kernel,
        out_shape=jax.ShapeDtypeStruct((B, 128), x.dtype),   # lane-dense output slab
        grid_spec=pltpu.PrefetchScalarGridSpec(
            num_scalar_prefetch=0,
            grid=grid,
            in_specs=[
                pl.BlockSpec((tile_b, tile_n), lambda b, i, j: (b, i)),  # x
                pl.BlockSpec((tile_b, tile_m), lambda b, i, j: (b, j)),  # y
                pl.BlockSpec((1, tile_n), lambda b, i, j: (0, i)),       # x_support
                pl.BlockSpec((1, tile_m), lambda b, i, j: (0, j)),       # y_support
            ],
            out_specs=pl.BlockSpec((tile_b, 128), lambda b, i, j: (b, 0)),
            scratch_shapes=[pltpu.VMEM((tile_b, tile_m), jnp.float32)],
        ),
        compiler_params=pltpu.CompilerParams(
            dimension_semantics=("parallel", "arbitrary", "arbitrary")),
    )(x, y, xs, ys)

    cost = out[:, 0]                                          # (B,)
    if reduction == 'mean':
        cost = cost.mean()
    elif reduction == 'sum':
        cost = cost.sum()
    return cost


def _reference(x, y, xs, ys, eps, p):
    # pure-JAX reference mirroring the torch forward (Sinkhorn loop never executes).
    x = jnp.asarray(x, jnp.float32)
    y = jnp.asarray(y, jnp.float32)
    if x.ndim == 1:
        x = x[None, :]
    if y.ndim == 1:
        y = y[None, :]
    xs = jnp.broadcast_to(jnp.asarray(xs, x.dtype).reshape(1, -1), x.shape)
    ys = jnp.broadcast_to(jnp.asarray(ys, x.dtype).reshape(1, -1), y.shape)
    xc = jnp.stack([xs, x], axis=-1)                          # (B, N, 2)
    yc = jnp.stack([ys, y], axis=-1)                          # (B, M, 2)
    cost = jnp.sum(jnp.abs(xc[:, :, None, :] - yc[:, None, :, :]) ** p, axis=-1)
    p1 = jnp.exp(-cost / eps)
    return jnp.sum(p1 * cost, axis=(-2, -1))


if __name__ == "__main__":
    key = jax.random.PRNGKey(0)
    eps, max_iter, threshold = 0.1, 100, 1e-1

    # --- small shapes consistent with the module ---
    k1, k2, k3, k4, k5, k6, k7, k8 = jax.random.split(key, 8)
    B, N, M = 2, 16, 16
    x = jax.random.normal(k1, (B, N), dtype=jnp.float32)
    y = jax.random.normal(k2, (B, M), dtype=jnp.float32)
    x_support = jax.random.uniform(k3, (N,), dtype=jnp.float32)
    y_support = jax.random.uniform(k4, (M,), dtype=jnp.float32)

    out = sinkhorn_distance(x, y, x_support, y_support,
                            eps=eps, max_iter=max_iter, threshold=threshold,
                            reduction='None', p=2)
    out = jax.block_until_ready(out)
    ref = _reference(x, y, x_support, y_support, eps, 2)
    assert out.shape == (B,)
    assert jnp.allclose(out, ref, rtol=1e-4, atol=1e-5), (out, ref)

    # --- larger shapes to exercise the tiled accumulation path ---
    B2, N2, M2 = 8, 512, 1024
    x2 = jax.random.normal(k5, (B2, N2), dtype=jnp.float32)
    y2 = jax.random.normal(k6, (B2, M2), dtype=jnp.float32)
    xs2 = jax.random.uniform(k7, (N2,), dtype=jnp.float32)
    ys2 = jax.random.uniform(k8, (M2,), dtype=jnp.float32)

    out2 = sinkhorn_distance(x2, y2, xs2, ys2,
                             eps=eps, max_iter=max_iter, threshold=threshold,
                             reduction='None', p=2)
    out2 = jax.block_until_ready(out2)
    ref2 = _reference(x2, y2, xs2, ys2, eps, 2)
    assert out2.shape == (B2,)
    assert jnp.allclose(out2, ref2, rtol=1e-4, atol=1e-4), (out2, ref2)

    print("KERNEL_OK")
</pallas_src>

<mosaic_0001>
module attributes {stable_mosaic.version = 11 : i64} {
  func.func @_sinkhorn_kernel(%arg0: i32, %arg1: i32, %arg2: i32, %arg3: memref<2x16xf32, #tpu.memory_space<vmem>>, %arg4: memref<2x16xf32, #tpu.memory_space<vmem>>, %arg5: memref<1x16xf32, #tpu.memory_space<vmem>>, %arg6: memref<1x16xf32, #tpu.memory_space<vmem>>, %arg7: memref<2x128xf32, #tpu.memory_space<vmem>>, %arg8: memref<2x16xf32, #tpu.memory_space<vmem>>) attributes {dimension_semantics = [#tpu.dimension_semantics<parallel>, #tpu.dimension_semantics<arbitrary>, #tpu.dimension_semantics<arbitrary>], iteration_bounds = array<i64: 1, 1, 1>, scalar_prefetch = 0 : i64, scratch_operands = 1 : i64, tpu.core_type = #tpu.core_type<tc>, window_params = [{transform_indices = @transform_0, window_bounds = array<i64: 2, 16>}, {transform_indices = @transform_1, window_bounds = array<i64: 2, 16>}, {transform_indices = @transform_2, window_bounds = array<i64: 1, 16>}, {transform_indices = @transform_3, window_bounds = array<i64: 1, 16>}, {transform_indices = @transform_4, window_bounds = array<i64: 2, 128>}]} {
    %c0_i32 = arith.constant 0 : i32
    %0 = arith.cmpi eq, %arg1, %c0_i32 : i32
    %c0_i32_0 = arith.constant 0 : i32
    %1 = arith.cmpi eq, %arg2, %c0_i32_0 : i32
    %2 = arith.andi %0, %1 : i1
    %3 = arith.extui %2 : i1 to i32
    %c0_i32_1 = arith.constant 0 : i32
    %4 = arith.cmpi ne, %3, %c0_i32_1 : i32
    scf.if %4 {
      %cst_17 = arith.constant 0.000000e+00 : f32
      %39 = vector.broadcast %cst_17 : f32 to vector<2x16xf32>
      %c0_18 = arith.constant 0 : index
      %c0_19 = arith.constant 0 : index
      %40 = vector.load %arg8[%c0_18, %c0_19] : memref<2x16xf32, #tpu.memory_space<vmem>>, vector<2x16xf32>
      tpu.vector_store %arg8[%c0_18, %c0_19], %39 {strides = array<i32>} : memref<2x16xf32, #tpu.memory_space<vmem>>, vector<2x16xf32>,
    } else {
    }
    %c0 = arith.constant 0 : index
    %c0_2 = arith.constant 0 : index
    %5 = vector.load %arg3[%c0, %c0_2] : memref<2x16xf32, #tpu.memory_space<vmem>>, vector<2x16xf32>
    %c0_3 = arith.constant 0 : index
    %c0_4 = arith.constant 0 : index
    %6 = vector.load %arg4[%c0_3, %c0_4] : memref<2x16xf32, #tpu.memory_space<vmem>>, vector<2x16xf32>
    %c0_5 = arith.constant 0 : index
    %c0_6 = arith.constant 0 : index
    %7 = vector.load %arg5[%c0_5, %c0_6] : memref<1x16xf32, #tpu.memory_space<vmem>>, vector<1x16xf32>
    %c0_7 = arith.constant 0 : index
    %c0_8 = arith.constant 0 : index
    %8 = vector.load %arg6[%c0_7, %c0_8] : memref<1x16xf32, #tpu.memory_space<vmem>>, vector<1x16xf32>
    %9 = vector.shape_cast %7 : vector<1x16xf32> to vector<16xf32>
    %10 = vector.shape_cast %9 : vector<16xf32> to vector<16x1xf32>
    %11 = vector.shape_cast %8 : vector<1x16xf32> to vector<16xf32>
    %12 = vector.shape_cast %11 : vector<16xf32> to vector<1x16xf32>
    %13 = vector.broadcast %10 : vector<16x1xf32> to vector<16x16xf32>
    %14 = vector.broadcast %12 : vector<1x16xf32> to vector<16x16xf32>
    %15 = arith.subf %13, %14 : vector<16x16xf32>
    %16 = arith.mulf %15, %15 : vector<16x16xf32>
    %17 = vector.shape_cast %5 : vector<2x16xf32> to vector<2x16x1xf32>
    %18 = vector.shape_cast %6 : vector<2x16xf32> to vector<2x1x16xf32>
    %19 = vector.broadcast %17 : vector<2x16x1xf32> to vector<2x16x16xf32>
    %20 = vector.broadcast %18 : vector<2x1x16xf32> to vector<2x16x16xf32>
    %21 = arith.subf %19, %20 : vector<2x16x16xf32>
    %22 = arith.mulf %21, %21 : vector<2x16x16xf32>
    %23 = vector.shape_cast %16 : vector<16x16xf32> to vector<1x16x16xf32>
    %24 = vector.broadcast %23 : vector<1x16x16xf32> to vector<2x16x16xf32>
    %25 = arith.addf %22, %24 : vector<2x16x16xf32>
    %cst = arith.constant -1.000000e+01 : f32
    %26 = vector.broadcast %cst : f32 to vector<2x16x16xf32>
    %27 = arith.mulf %25, %26 : vector<2x16x16xf32>
    %28 = math.exp %27 : vector<2x16x16xf32>
    %29 = arith.mulf %28, %25 : vector<2x16x16xf32>
    %c0_9 = arith.constant 0 : index
    %c0_10 = arith.constant 0 : index
    %30 = vector.load %arg8[%c0_9, %c0_10] : memref<2x16xf32, #tpu.memory_space<vmem>>, vector<2x16xf32>
    %cst_11 = arith.constant dense<0.000000e+00> : vector<2x16xf32>
    %31 = vector.multi_reduction <add>, %29, %cst_11 [1] : vector<2x16x16xf32> to vector<2x16xf32>
    %32 = arith.addf %30, %31 : vector<2x16xf32>
    %c0_12 = arith.constant 0 : index
    %c0_13 = arith.constant 0 : index
    %33 = vector.load %arg8[%c0_12, %c0_13] : memref<2x16xf32, #tpu.memory_space<vmem>>, vector<2x16xf32>
    tpu.vector_store %arg8[%c0_12, %c0_13], %32 {strides = array<i32>} : memref<2x16xf32, #tpu.memory_space<vmem>>, vector<2x16xf32>,
    %c0_i32_14 = arith.constant 0 : i32
    %34 = arith.cmpi eq, %arg1, %c0_i32_14 : i32
    %c0_i32_15 = arith.constant 0 : i32
    %35 = arith.cmpi eq, %arg2, %c0_i32_15 : i32
    %36 = arith.andi %34, %35 : i1
    %37 = arith.extui %36 : i1 to i32
    %c0_i32_16 = arith.constant 0 : i32
    %38 = arith.cmpi ne, %37, %c0_i32_16 : i32
    scf.if %38 {
      %c0_17 = arith.constant 0 : index
      %c0_18 = arith.constant 0 : index
      %39 = vector.load %arg8[%c0_17, %c0_18] : memref<2x16xf32, #tpu.memory_space<vmem>>, vector<2x16xf32>
      %cst_19 = arith.constant dense<0.000000e+00> : vector<2xf32>
      %40 = vector.multi_reduction <add>, %39, %cst_19 [1] : vector<2x16xf32> to vector<2xf32>
      %41 = vector.shape_cast %40 : vector<2xf32> to vector<2x1xf32>
      %42 = vector.shape_cast %41 : vector<2x1xf32> to vector<2x1xf32>
      %43 = vector.broadcast %42 : vector<2x1xf32> to vector<2x128xf32>
      %c0_20 = arith.constant 0 : index
      %c0_21 = arith.constant 0 : index
      %44 = vector.load %arg7[%c0_20, %c0_21] : memref<2x128xf32, #tpu.memory_space<vmem>>, vector<2x128xf32>
      tpu.vector_store %arg7[%c0_20, %c0_21], %43 {strides = array<i32>} : memref<2x128xf32, #tpu.memory_space<vmem>>, vector<2x128xf32>,
    } else {
    }
    return
  }
  func.func @transform_0(%arg0: i32, %arg1: i32, %arg2: i32) -> (i32, i32) {
    %c0_i32 = arith.constant 0 : i32
    return %arg0, %arg1 : i32, i32
  }
  func.func @transform_1(%arg0: i32, %arg1: i32, %arg2: i32) -> (i32, i32) {
    %c0_i32 = arith.constant 0 : i32
    return %arg0, %arg2 : i32, i32
  }
  func.func @transform_2(%arg0: i32, %arg1: i32, %arg2: i32) -> (i32, i32) {
    %c0_i32 = arith.constant 0 : i32
    %c0_i32_0 = arith.constant 0 : i32
    return %c0_i32, %arg1 : i32, i32
  }
  func.func @transform_3(%arg0: i32, %arg1: i32, %arg2: i32) -> (i32, i32) {
    %c0_i32 = arith.constant 0 : i32
    %c0_i32_0 = arith.constant 0 : i32
    return %c0_i32, %arg2 : i32, i32
  }
  func.func @transform_4(%arg0: i32, %arg1: i32, %arg2: i32) -> (i32, i32) {
    %c0_i32 = arith.constant 0 : i32
    %c0_i32_0 = arith.constant 0 : i32
    return %arg0, %c0_i32 : i32, i32
  }
}

</mosaic_0001>

<bundles_post_ra>
// kernel: tpu_custom_call.1
= control target key start
LH: loop header
LB: loop body
LE: loop exit
PB: predicated region body
PF: predicated region fallthrough
CT: control target
= control target key end

     0   :  { %9 = vsyncpa [#allocation4], 0  ;;  %s324_s0 = inlined_call_operand.hbm [shape: f32[2,16], index: 0, kind: input, shape index: {}]   ;;  %s325_s1 = inlined_call_operand.vmem [shape: f32[2,16], index: 1, kind: input, shape index: {}]   ;;  %s326_s2 = inlined_call_operand.vmem [shape: f32[1,16], index: 2, kind: input, shape index: {}]   ;;  %s327_s3 = inlined_call_operand.vmem [shape: f32[1,16], index: 3, kind: input, shape index: {}]   ;;  %s328_s4 = inlined_call_operand.hbm [shape: f32[2,128], index: 4, kind: output, shape index: {}]  }
   0x1   :  { %10 = vsyncpa [#allocation5], 0  ;;  %s259_s15 = smov [#allocation3]   ;;  %s211_s19 = scalar_lea.hbm %s324_s0, 32 }
   0x2   :  { %s17_s16 = sshll.u32 %s259_s15, 4  ;;  %p212_p0 = scmp.ne.s32.totalorder %s324_s0, %s211_s19  ;;  %s18_s16 = int_to_ptr.vmem [resolvable:$true] %s17_s16 }
   0x3   :  { %p215_p1 = scmp.lt.u32.totalorder %s211_s19, %s324_s0 }
   0x5   :  { %p217_p2 = pnand %p215_p1, %p212_p0 }
   0x7   :  { %220 = shalt.err (!%p217_p2)
}
   0x8   :  { %s221_s24 = scalar_lea.vmem %s18_s16, 32  ;;  %p226_p4 = scmp.lt.s32.totalorder %s18_s16, %s18_s16 }
   0x9   :  { %p222_p3 = scmp.ne.s32.totalorder %s18_s16, %s221_s24  ;;  %p227_p5 = scmp.lt.s32.totalorder %s221_s24, %s221_s24 }
   0xb   :  { %p228_p6 = por %p227_p5, %p226_p4 }
   0xd   :  { %p229_p7 = pnand %p228_p6, %p222_p3 }
   0xf   :  { %232 = shalt.err (!%p229_p7)
}
  0x10   :  { %20 = dma.hbm_to_vmem [thread:$0]  %s324_s0, 32, %s18_s16, [#allocation4]  }
  0x11   :  { %255 = dma.done.wait [#allocation4], 32  }
  0x12   :  { %256 = vsyncadd [#allocation4], 4294967264  ;;  %v63_v0 = vlaneseq  ;;  %v260_v1 = vmov 1966171168   ;;  %v196_v7 = vld [vmem:[%s326_s2] ss:$0 sm:$0xff] }
  0x13   :  { %v95_v2 = vunpack.c.l.s4 %v260_v1  ;;  %v38_v8 = vld [vmem:[#allocation3] sm:$0x3]  ;;  %47 = vbcast.lane.b32.xlu0 %v196_v7, 256  ;;  %vm36_vm0 = vcmask 123904   ;;  %v261_v18 = vmov 0.0   ;;  %vm147_vm1 = vcmask 130048  }
  0x14   :  { %v64_v3 = vshrl.u32 %v63_v0, 7  ;;  %v198_v11 = vld.sshfl [vmem:[%s325_s1] sm:$0x11 pattern:$0x75316420]  ;;  %vm168_vm2 = vcmask 1041409  }
  0x15   :  { %v96_v4 = vunpack.c.0.s8 %v95_v2  ;;  %v93_v13 = vcombine.high %v198_v11, %v198_v11  ;;  %37 = vst.msk [vmem:[#allocation2] sm:$0x3] %vm36_vm0, %v261_v18  ;;  %v197_v19 = vld [vmem:[%s327_s3] ss:$0 sm:$0xff]  ;;  %s262_s1 = smov [#allocation6]  }
  0x16   :  { %v65_v5 = vsub.s32 0, %v64_v3  ;;  %v76_v10 = vsub.s32 1, %v64_v3  ;;  %s187_s3 = sshll.u32 %s262_s1, 4  ;;  %s188_s3 = int_to_ptr.vmem [resolvable:$true] %s187_s3 }
  0x17   :  { %v99_v6 = vsub.s32 %v96_v4, %v64_v3  ;;  %51 = vbcast.lane.b32.xlu0 %v196_v7, 264  ;;  %s233_s5 = scalar_lea.vmem %s188_s3, 32  ;;  %p238_p9 = scmp.lt.s32.totalorder %s188_s3, %s188_s3 }
  0x18   :  { %v66_v9 = vrot.slane %v38_v8, %v65_v5  ;;  %v77_v16 = vrot.slane %v38_v8, %v76_v10  ;;  %p234_p8 = scmp.ne.s32.totalorder %s188_s3, %s233_s5  ;;  %p239_p10 = scmp.lt.s32.totalorder %s233_s5, %s233_s5 }
  0x19   :  { %v100_v12 = vrot.slane %v198_v11, %v99_v6  ;;  %v107_v15 = vrot.slane %v93_v13, %v99_v6 }
  0x1a   :  { %68 = vbcast.lane.b32.xlu1 %v66_v9, 256  ;;  %p240_p11 = por %p239_p10, %p238_p9 }
  0x1b   :  { %v111_v14 = vrot.slane %v100_v12, %v65_v5  ;;  %v115_v17 = vrot.slane %v107_v15, %v65_v5  ;;  %79 = vbcast.lane.b32.xlu0 %v77_v16, 256 }
  0x1c   :  { %v146_v12 = vld [vmem:[#allocation2] sm:$0x3]  ;;  %p241_p12 = pnand %p240_p11, %p234_p8 }
  0x1e   :  { %72 = vbcast.lane.b32.xlu1 %v66_v9, 264 }
  0x22   :  { %83 = vbcast.lane.b32.xlu1 %v77_v16, 264 }
  0x85   :  { %v48_v20 = vpop.permute.xlu0 %47 }
  0x86   :  { %v59_v21 = vsub.f32 %v48_v20, %v197_v19 }
  0x88   :  { %v61_v23 = vmul.f32 %v59_v21, %v59_v21 }
  0x89   :  { %v52_v25 = vpop.permute.xlu0 %51 }
  0x8a   :  { %v60_v27 = vsub.f32 %v52_v25, %v197_v19 }
  0x8c   :  { %v69_v22 = vpop.permute.xlu1 %68  ;;  %v62_v30 = vmul.f32 %v60_v27, %v60_v27 }
  0x8d   :  { %v118_v24 = vsub.f32 %v69_v22, %v111_v14  ;;  %v80_v32 = vpop.permute.xlu0 %79 }
  0x8e   :  { %v120_v35 = vsub.f32 %v80_v32, %v115_v17 }
  0x8f   :  { %v122_v26 = vmul.f32 %v118_v24, %v118_v24 }
  0x90   :  { %v73_v28 = vpop.permute.xlu1 %72  ;;  %v124_v39 = vmul.f32 %v120_v35, %v120_v35 }
  0x91   :  { %v126_v29 = vadd.f32 %v122_v26, %v61_v23  ;;  %v119_v31 = vsub.f32 %v73_v28, %v111_v14 }
  0x92   :  { %v128_v42 = vadd.f32 %v124_v39, %v61_v23 }
  0x93   :  { %v130_v33 = vmul.f32 -10.0, %v126_v29  ;;  %v123_v34 = vmul.f32 %v119_v31, %v119_v31 }
  0x94   :  { %v84_v36 = vpop.permute.xlu1 %83  ;;  %v132_v45 = vmul.f32 -10.0, %v128_v42 }
  0x95   :  { %v134_v37 = vmul.f32 1.442695, %v130_v33  ;;  %v127_v38 = vadd.f32 %v123_v34, %v62_v30  ;;  %v121_v40 = vsub.f32 %v84_v36, %v115_v17 }
  0x96   :  { %v138_v47 = vmul.f32 1.442695, %v132_v45 }
  0x97   :  { %203 = vpow2.f32 %v134_v37  ;;  %v131_v41 = vmul.f32 -10.0, %v127_v38  ;;  %v125_v43 = vmul.f32 %v121_v40, %v121_v40 }
  0x99   :  { %v136_v44 = vmul.f32 1.442695, %v131_v41  ;;  %v129_v46 = vadd.f32 %v125_v43, %v62_v30 }
  0x9b   :  { %205 = vpow2.f32 %v136_v44  ;;  %v133_v48 = vmul.f32 -10.0, %v129_v46 }
  0x9c   :  { %207 = vpow2.f32 %v138_v47 }
  0x9d   :  { %v140_v49 = vmul.f32 1.442695, %v133_v48 }
  0x9f   :  { %209 = vpow2.f32 %v140_v49 }
  0xa1   :  { %v204_v50 = vpop.eup %203 }
  0xa2   :  { %v142_v51 = vmul.f32 %v204_v50, %v126_v29 }
  0xa4   :  { %v148_v55 = vsel %vm147_vm1, %v142_v51, 0.0 }
  0xa5   :  { %v206_v52 = vpop.eup %205 }
  0xa6   :  { %v143_v53 = vmul.f32 %v206_v52, %v127_v38  ;;  %v208_v54 = vpop.eup %207 }
  0xa7   :  { %v144_v57 = vmul.f32 %v208_v54, %v128_v42 }
  0xa8   :  { %v149_v56 = vsel %vm147_vm1, %v143_v53, 0.0 }
  0xa9   :  { %v210_v58 = vpop.eup %209  ;;  %v150_v59 = vadd.f32 %v149_v56, %v148_v55  ;;  %v157_v62 = vsel %vm147_vm1, %v144_v57, 0.0 }
  0xaa   :  { %v145_v60 = vmul.f32 %v210_v58, %v129_v46 }
  0xab   :  { %v151_v61 = vrot.slane %v150_v59, 4 }
  0xac   :  { %v158_v63 = vsel %vm147_vm1, %v145_v60, 0.0 }
  0xad   :  { %v152_v0 = vadd.f32 %v151_v61, %v150_v59  ;;  %v159_v1 = vadd.f32 %v158_v63, %v157_v62 }
  0xaf   :  { %v153_v2 = vrot.slane %v152_v0, 2  ;;  %v160_v3 = vrot.slane %v159_v1, 4 }
  0xb1   :  { %v154_v4 = vadd.f32 %v153_v2, %v152_v0  ;;  %v161_v5 = vadd.f32 %v160_v3, %v159_v1 }
  0xb3   :  { %v162_v6 = vrot.slane %v161_v5, 2  ;;  %v155_v7 = vrot.slane %v154_v4, 1 }
  0xb5   :  { %v163_v8 = vadd.f32 %v162_v6, %v161_v5  ;;  %v156_v10 = vadd.f32 %v155_v7, %v154_v4 }
  0xb7   :  { %v164_v9 = vrot.slane %v163_v8, 1 }
  0xb9   :  { %v165_v11 = vadd.f32 %v164_v9, %v163_v8 }
  0xbb   :  { %v169_v13 = vsel %vm168_vm2, %v165_v11, %v156_v10 }
  0xbc   :  { %v171_v14 = vadd.f32 %v169_v13, %v146_v12 }
  0xbe   :  { %173 = vst.msk [vmem:[#allocation2] sm:$0x3] %vm36_vm0, %v171_v14 }
  0xc5   :  { %v176_v15 = vld [vmem:[#allocation2] sm:$0x3] }
  0xc6   :  { %v177_v16 = vsel %vm36_vm0, %v176_v15, 0.0 }
  0xc7   :  { %178 = vadd.xlane.f32.xlu0 %v177_v16 }
 0x154   :  { %v179_v17 = vpop.xlane.xlu0 %178 }
 0x155   :  { %180 = vst [vmem:[#allocation6] sm:$0x3] %v179_v17 }
 0x156   :  { %244 = shalt.err (!%p241_p12)
}
 0x157   :  { %s245_s8 = scalar_lea.hbm %s328_s4, 32 }
 0x158   :  { %p246_p13 = scmp.ne.s32.totalorder %s328_s4, %s245_s8  ;;  %p249_p0 = scmp.lt.u32.totalorder %s245_s8, %s328_s4 }
 0x15a   :  { %p251_p1 = pnand %p249_p0, %p246_p13 }
 0x15c   :  { %254 = shalt.err (!%p251_p1)
}
 0x15d   :  { %190 = dma.vmem_to_hbm [thread:$0]  %s188_s3, 32, %s328_s4, [#allocation5]  }
 0x15e   :  { %257 = dma.done.wait [#allocation5], 32  }
 0x15f   :  { %258 = vsyncadd [#allocation5], 4294967264 }
 0x160   :  { %194 = vsyncpa [#allocation4], 1 }
 0x161   :  { %195 = vsyncpa [#allocation5], 1 }

</bundles_post_ra>
